<compile_context>
chip_gen: v7x
topology: tpu7x:2x2x1
jax: 0.10.0
libtpu: 0.0.40
codegen_flags: <defaults>
</compile_context>

<pallas_src>
import functools

import jax
import jax.numpy as jnp
from jax.experimental import pallas as pl
from jax.experimental.pallas import tpu as pltpu


def _round_up(x, m):
    return ((x + m - 1) // m) * m


# ----------------------------------------------------------------------------
# Kernel: one batch block per grid step.
# ----------------------------------------------------------------------------
def _deeponet_kernel(
    branch_ref, trunk_ref,        # [BM, F_b], [BM, F_t]
    m_ref, v_ref,                 # contracted branch params: [F_b, C], [F_b, 1]
    w1_ref, b1_ref,               # trunk layer 1: [F_t, C], [1, C]
    w2_ref, b2_ref,               # trunk layer 2: [C, C],   [1, C]
    w3_ref, b3_ref,               # trunk layer 3
    w4_ref, b4_ref,               # trunk layer 4
    out_ref,                      # [BM, 1]
):
    f32 = jnp.float32

    # ---- trunk net hidden chain: 4 x (Linear + Tanh) ----
    h = jnp.tanh(jnp.dot(trunk_ref[...], w1_ref[...],
                         preferred_element_type=f32) + b1_ref[...])   # [BM, C]
    h = jnp.tanh(jnp.dot(h, w2_ref[...], preferred_element_type=f32) + b2_ref[...])
    h = jnp.tanh(jnp.dot(h, w3_ref[...], preferred_element_type=f32) + b3_ref[...])
    h = jnp.tanh(jnp.dot(h, w4_ref[...], preferred_element_type=f32) + b4_ref[...])

    # ---- contracted branch/combine stage ----
    u = jnp.dot(branch_ref[...], m_ref[...], preferred_element_type=f32)    # [BM, C]
    bias = jnp.dot(branch_ref[...], v_ref[...], preferred_element_type=f32) # [BM, 1]
    out_ref[...] = jnp.sum(u * h, axis=1, keepdims=True) + bias             # [BM, 1]


# ----------------------------------------------------------------------------
# Wrapper: batch tiling + padding, weights resident in VMEM.
# ----------------------------------------------------------------------------
def deeponet_forward(branch_input, trunk_input, kparams, *, block_m=256):
    """branch_input: [B, F_b], trunk_input: [B, F_t] -> [B, 1] float32."""
    B, F_b = branch_input.shape
    F_t = trunk_input.shape[1]
    C = kparams["w1"].shape[1]

    # Choose a batch block (multiple of 8) and pad the batch to a multiple of it.
    bm = min(block_m, _round_up(B, 8))
    Bp = _round_up(B, bm)
    if Bp != B:
        branch_input = jnp.pad(branch_input, ((0, Bp - B), (0, 0)))
        trunk_input = jnp.pad(trunk_input, ((0, Bp - B), (0, 0)))

    grid = (Bp // bm,)

    def batched(feat):
        return pl.BlockSpec((bm, feat), lambda i: (i, 0))

    def resident(shape):
        # Constant block index -> the weight block never changes across the grid,
        # so it is fetched once and stays VMEM-resident.
        return pl.BlockSpec(shape, lambda i: (0, 0))

    in_specs = [
        batched(F_b), batched(F_t),
        resident(kparams["m"].shape), resident(kparams["v"].shape),
        resident(kparams["w1"].shape), resident(kparams["b1"].shape),
        resident(kparams["w2"].shape), resident(kparams["b2"].shape),
        resident(kparams["w3"].shape), resident(kparams["b3"].shape),
        resident(kparams["w4"].shape), resident(kparams["b4"].shape),
    ]

    out = pl.pallas_call(
        _deeponet_kernel,
        out_shape=jax.ShapeDtypeStruct((Bp, 1), jnp.float32),
        grid=grid,
        in_specs=in_specs,
        out_specs=pl.BlockSpec((bm, 1), lambda i: (i, 0)),
        compiler_params=pltpu.CompilerParams(
            dimension_semantics=("parallel",)),
    )(branch_input, trunk_input,
      kparams["m"], kparams["v"],
      kparams["w1"], kparams["b1"],
      kparams["w2"], kparams["b2"],
      kparams["w3"], kparams["b3"],
      kparams["w4"], kparams["b4"])

    return out[:B]


# ----------------------------------------------------------------------------
# Parameter construction (matches the torch module shapes; weights stored
# [in, out] so the kernel / reference compute y = x @ W + b).
# ----------------------------------------------------------------------------
def init_raw_params(key, branch_features, trunk_features, common_features, p=2000):
    ks = jax.random.split(key, 12)

    def rnd(k, shape, scale=0.1):
        return (scale * jax.random.normal(k, shape)).astype(jnp.float32)

    C = common_features
    return {
        # branch: Linear(branch_features, 2000, bias=False)
        "wb": rnd(ks[0], (branch_features, p)),
        # trunk: 4x (Linear + Tanh) then Linear(C, 2000)
        "w1": rnd(ks[1], (trunk_features, C)), "b1": rnd(ks[2], (1, C)),
        "w2": rnd(ks[3], (C, C)),              "b2": rnd(ks[4], (1, C)),
        "w3": rnd(ks[5], (C, C)),              "b3": rnd(ks[6], (1, C)),
        "w4": rnd(ks[7], (C, C)),              "b4": rnd(ks[8], (1, C)),
        "w5": rnd(ks[9], (C, p)),              "b5": rnd(ks[10], (1, p)),
        # last_layer_weights: randn(2000)
        "last_w": rnd(ks[11], (1, p), scale=1.0),
    }


def prepare_kernel_params(raw):
    """One-time contraction of wb, w5, b5, last_w into M=[F_b,C], v=[F_b,1]."""
    wb_scaled = raw["wb"] * raw["last_w"]                 # [F_b, P]
    m = wb_scaled @ raw["w5"].T                           # [F_b, C]
    v = wb_scaled @ raw["b5"].T                           # [F_b, 1]
    return {
        "m": m.astype(jnp.float32), "v": v.astype(jnp.float32),
        "w1": raw["w1"], "b1": raw["b1"],
        "w2": raw["w2"], "b2": raw["b2"],
        "w3": raw["w3"], "b3": raw["b3"],
        "w4": raw["w4"], "b4": raw["b4"],
    }


def _reference_forward(branch_input, trunk_input, raw):
    """Pure-JAX reference in the ORIGINAL (un-contracted) torch form."""
    branch_out = branch_input @ raw["wb"]                                   # [B, P]
    h = jnp.tanh(trunk_input @ raw["w1"] + raw["b1"])
    h = jnp.tanh(h @ raw["w2"] + raw["b2"])
    h = jnp.tanh(h @ raw["w3"] + raw["b3"])
    h = jnp.tanh(h @ raw["w4"] + raw["b4"])
    trunk_out = h @ raw["w5"] + raw["b5"]                                   # [B, P]
    return jnp.sum(branch_out * trunk_out * raw["last_w"], axis=1, keepdims=True)


if __name__ == "__main__":
    branch_features = 16
    trunk_features = 2       # (x, y) coordinates for the 2D Laplace PINN
    common_features = 32

    key = jax.random.PRNGKey(0)
    k_param, k_b1, k_t1, k_b2, k_t2 = jax.random.split(key, 5)

    raw = init_raw_params(k_param, branch_features, trunk_features, common_features)
    kparams = prepare_kernel_params(raw)

    # --- small demo batch ---
    B = 8
    branch_in = jax.random.normal(k_b1, (B, branch_features), dtype=jnp.float32)
    trunk_in = jax.random.normal(k_t1, (B, trunk_features), dtype=jnp.float32)

    out = jax.block_until_ready(deeponet_forward(branch_in, trunk_in, kparams))
    ref = _reference_forward(branch_in, trunk_in, raw)
    assert out.shape == (B, 1)
    assert jnp.allclose(out, ref, rtol=1e-3, atol=1e-3), (out, ref)

    # --- non-multiple batch exercising the grid + padding path ---
    B2 = 300
    branch_in2 = jax.random.normal(k_b2, (B2, branch_features), dtype=jnp.float32)
    trunk_in2 = jax.random.normal(k_t2, (B2, trunk_features), dtype=jnp.float32)

    out2 = jax.block_until_ready(
        deeponet_forward(branch_in2, trunk_in2, kparams, block_m=128))
    ref2 = _reference_forward(branch_in2, trunk_in2, raw)
    assert out2.shape == (B2, 1)
    assert jnp.allclose(out2, ref2, rtol=1e-3, atol=1e-3), (out2, ref2)

    print("KERNEL_OK")
</pallas_src>

<mosaic_0001>
module attributes {stable_mosaic.version = 11 : i64} {
  func.func @_deeponet_kernel(%arg0: i32, %arg1: memref<8x16xf32, #tpu.memory_space<vmem>>, %arg2: memref<8x2xf32, #tpu.memory_space<vmem>>, %arg3: memref<16x32xf32, #tpu.memory_space<vmem>>, %arg4: memref<16x1xf32, #tpu.memory_space<vmem>>, %arg5: memref<2x32xf32, #tpu.memory_space<vmem>>, %arg6: memref<1x32xf32, #tpu.memory_space<vmem>>, %arg7: memref<32x32xf32, #tpu.memory_space<vmem>>, %arg8: memref<1x32xf32, #tpu.memory_space<vmem>>, %arg9: memref<32x32xf32, #tpu.memory_space<vmem>>, %arg10: memref<1x32xf32, #tpu.memory_space<vmem>>, %arg11: memref<32x32xf32, #tpu.memory_space<vmem>>, %arg12: memref<1x32xf32, #tpu.memory_space<vmem>>, %arg13: memref<8x1xf32, #tpu.memory_space<vmem>>) attributes {dimension_semantics = [#tpu.dimension_semantics<parallel>], iteration_bounds = array<i64: 1>, scalar_prefetch = 0 : i64, scratch_operands = 0 : i64, tpu.core_type = #tpu.core_type<tc>, window_params = [{transform_indices = @transform_0, window_bounds = array<i64: 8, 16>}, {transform_indices = @transform_1, window_bounds = array<i64: 8, 2>}, {pipeline_mode = #tpu.pipeline_mode<synchronous>, transform_indices = @transform_2, window_bounds = array<i64: 16, 32>}, {pipeline_mode = #tpu.pipeline_mode<synchronous>, transform_indices = @transform_3, window_bounds = array<i64: 16, 1>}, {pipeline_mode = #tpu.pipeline_mode<synchronous>, transform_indices = @transform_4, window_bounds = array<i64: 2, 32>}, {pipeline_mode = #tpu.pipeline_mode<synchronous>, transform_indices = @transform_5, window_bounds = array<i64: 1, 32>}, {pipeline_mode = #tpu.pipeline_mode<synchronous>, transform_indices = @transform_6, window_bounds = array<i64: 32, 32>}, {pipeline_mode = #tpu.pipeline_mode<synchronous>, transform_indices = @transform_7, window_bounds = array<i64: 1, 32>}, {pipeline_mode = #tpu.pipeline_mode<synchronous>, transform_indices = @transform_8, window_bounds = array<i64: 32, 32>}, {pipeline_mode = #tpu.pipeline_mode<synchronous>, transform_indices = @transform_9, window_bounds = array<i64: 1, 32>}, {pipeline_mode = #tpu.pipeline_mode<synchronous>, transform_indices = @transform_10, window_bounds = array<i64: 32, 32>}, {pipeline_mode = #tpu.pipeline_mode<synchronous>, transform_indices = @transform_11, window_bounds = array<i64: 1, 32>}, {transform_indices = @transform_12, window_bounds = array<i64: 8, 1>}]} {
    %c0 = arith.constant 0 : index
    %c0_0 = arith.constant 0 : index
    %0 = vector.load %arg2[%c0, %c0_0] : memref<8x2xf32, #tpu.memory_space<vmem>>, vector<8x2xf32>
    %c0_1 = arith.constant 0 : index
    %c0_2 = arith.constant 0 : index
    %1 = vector.load %arg5[%c0_1, %c0_2] : memref<2x32xf32, #tpu.memory_space<vmem>>, vector<2x32xf32>
    %cst = arith.constant dense<0.000000e+00> : vector<8x32xf32>
    %2 = tpu.matmul %0, %1, %cst {dimension_numbers = #tpu.dot_dimension_numbers<[1], [0], [0], [1], [0, 0, 1, 1], [], []>} : vector<8x2xf32>, vector<2x32xf32>, vector<8x32xf32> -> vector<8x32xf32>
    %c0_3 = arith.constant 0 : index
    %c0_4 = arith.constant 0 : index
    %3 = vector.load %arg6[%c0_3, %c0_4] : memref<1x32xf32, #tpu.memory_space<vmem>>, vector<1x32xf32>
    %4 = vector.broadcast %3 : vector<1x32xf32> to vector<8x32xf32>
    %5 = arith.addf %2, %4 : vector<8x32xf32>
    %6 = math.tanh %5 : vector<8x32xf32>
    %c0_5 = arith.constant 0 : index
    %c0_6 = arith.constant 0 : index
    %7 = vector.load %arg7[%c0_5, %c0_6] : memref<32x32xf32, #tpu.memory_space<vmem>>, vector<32x32xf32>
    %cst_7 = arith.constant dense<0.000000e+00> : vector<8x32xf32>
    %8 = tpu.matmul %6, %7, %cst_7 {dimension_numbers = #tpu.dot_dimension_numbers<[1], [0], [0], [1], [0, 0, 1, 1], [], []>} : vector<8x32xf32>, vector<32x32xf32>, vector<8x32xf32> -> vector<8x32xf32>
    %c0_8 = arith.constant 0 : index
    %c0_9 = arith.constant 0 : index
    %9 = vector.load %arg8[%c0_8, %c0_9] : memref<1x32xf32, #tpu.memory_space<vmem>>, vector<1x32xf32>
    %10 = vector.broadcast %9 : vector<1x32xf32> to vector<8x32xf32>
    %11 = arith.addf %8, %10 : vector<8x32xf32>
    %12 = math.tanh %11 : vector<8x32xf32>
    %c0_10 = arith.constant 0 : index
    %c0_11 = arith.constant 0 : index
    %13 = vector.load %arg9[%c0_10, %c0_11] : memref<32x32xf32, #tpu.memory_space<vmem>>, vector<32x32xf32>
    %cst_12 = arith.constant dense<0.000000e+00> : vector<8x32xf32>
    %14 = tpu.matmul %12, %13, %cst_12 {dimension_numbers = #tpu.dot_dimension_numbers<[1], [0], [0], [1], [0, 0, 1, 1], [], []>} : vector<8x32xf32>, vector<32x32xf32>, vector<8x32xf32> -> vector<8x32xf32>
    %c0_13 = arith.constant 0 : index
    %c0_14 = arith.constant 0 : index
    %15 = vector.load %arg10[%c0_13, %c0_14] : memref<1x32xf32, #tpu.memory_space<vmem>>, vector<1x32xf32>
    %16 = vector.broadcast %15 : vector<1x32xf32> to vector<8x32xf32>
    %17 = arith.addf %14, %16 : vector<8x32xf32>
    %18 = math.tanh %17 : vector<8x32xf32>
    %c0_15 = arith.constant 0 : index
    %c0_16 = arith.constant 0 : index
    %19 = vector.load %arg11[%c0_15, %c0_16] : memref<32x32xf32, #tpu.memory_space<vmem>>, vector<32x32xf32>
    %cst_17 = arith.constant dense<0.000000e+00> : vector<8x32xf32>
    %20 = tpu.matmul %18, %19, %cst_17 {dimension_numbers = #tpu.dot_dimension_numbers<[1], [0], [0], [1], [0, 0, 1, 1], [], []>} : vector<8x32xf32>, vector<32x32xf32>, vector<8x32xf32> -> vector<8x32xf32>
    %c0_18 = arith.constant 0 : index
    %c0_19 = arith.constant 0 : index
    %21 = vector.load %arg12[%c0_18, %c0_19] : memref<1x32xf32, #tpu.memory_space<vmem>>, vector<1x32xf32>
    %22 = vector.broadcast %21 : vector<1x32xf32> to vector<8x32xf32>
    %23 = arith.addf %20, %22 : vector<8x32xf32>
    %24 = math.tanh %23 : vector<8x32xf32>
    %c0_20 = arith.constant 0 : index
    %c0_21 = arith.constant 0 : index
    %25 = vector.load %arg1[%c0_20, %c0_21] : memref<8x16xf32, #tpu.memory_space<vmem>>, vector<8x16xf32>
    %c0_22 = arith.constant 0 : index
    %c0_23 = arith.constant 0 : index
    %26 = vector.load %arg3[%c0_22, %c0_23] : memref<16x32xf32, #tpu.memory_space<vmem>>, vector<16x32xf32>
    %cst_24 = arith.constant dense<0.000000e+00> : vector<8x32xf32>
    %27 = tpu.matmul %25, %26, %cst_24 {dimension_numbers = #tpu.dot_dimension_numbers<[1], [0], [0], [1], [0, 0, 1, 1], [], []>} : vector<8x16xf32>, vector<16x32xf32>, vector<8x32xf32> -> vector<8x32xf32>
    %c0_25 = arith.constant 0 : index
    %c0_26 = arith.constant 0 : index
    %28 = vector.load %arg1[%c0_25, %c0_26] : memref<8x16xf32, #tpu.memory_space<vmem>>, vector<8x16xf32>
    %c0_27 = arith.constant 0 : index
    %c0_28 = arith.constant 0 : index
    %29 = vector.load %arg4[%c0_27, %c0_28] : memref<16x1xf32, #tpu.memory_space<vmem>>, vector<16x1xf32>
    %cst_29 = arith.constant dense<0.000000e+00> : vector<8x1xf32>
    %30 = tpu.matmul %28, %29, %cst_29 {dimension_numbers = #tpu.dot_dimension_numbers<[1], [0], [0], [1], [0, 0, 1, 1], [], []>} : vector<8x16xf32>, vector<16x1xf32>, vector<8x1xf32> -> vector<8x1xf32>
    %31 = arith.mulf %27, %24 : vector<8x32xf32>
    %cst_30 = arith.constant dense<0.000000e+00> : vector<8xf32>
    %32 = vector.multi_reduction <add>, %31, %cst_30 [1] : vector<8x32xf32> to vector<8xf32>
    %33 = vector.shape_cast %32 : vector<8xf32> to vector<8x1xf32>
    %34 = arith.addf %33, %30 : vector<8x1xf32>
    %c0_31 = arith.constant 0 : index
    %c0_32 = arith.constant 0 : index
    %35 = vector.load %arg13[%c0_31, %c0_32] : memref<8x1xf32, #tpu.memory_space<vmem>>, vector<8x1xf32>
    tpu.vector_store %arg13[%c0_31, %c0_32], %34 {strides = array<i32>} : memref<8x1xf32, #tpu.memory_space<vmem>>, vector<8x1xf32>,
    return
  }
  func.func @transform_0(%arg0: i32) -> (i32, i32) {
    %c0_i32 = arith.constant 0 : i32
    %c0_i32_0 = arith.constant 0 : i32
    return %arg0, %c0_i32 : i32, i32
  }
  func.func @transform_1(%arg0: i32) -> (i32, i32) {
    %c0_i32 = arith.constant 0 : i32
    %c0_i32_0 = arith.constant 0 : i32
    return %arg0, %c0_i32 : i32, i32
  }
  func.func @transform_2(%arg0: i32) -> (i32, i32) {
    %c0_i32 = arith.constant 0 : i32
    %c0_i32_0 = arith.constant 0 : i32
    %c0_i32_1 = arith.constant 0 : i32
    return %c0_i32, %c0_i32_0 : i32, i32
  }
  func.func @transform_3(%arg0: i32) -> (i32, i32) {
    %c0_i32 = arith.constant 0 : i32
    %c0_i32_0 = arith.constant 0 : i32
    %c0_i32_1 = arith.constant 0 : i32
    return %c0_i32, %c0_i32_0 : i32, i32
  }
  func.func @transform_4(%arg0: i32) -> (i32, i32) {
    %c0_i32 = arith.constant 0 : i32
    %c0_i32_0 = arith.constant 0 : i32
    %c0_i32_1 = arith.constant 0 : i32
    return %c0_i32, %c0_i32_0 : i32, i32
  }
  func.func @transform_5(%arg0: i32) -> (i32, i32) {
    %c0_i32 = arith.constant 0 : i32
    %c0_i32_0 = arith.constant 0 : i32
    %c0_i32_1 = arith.constant 0 : i32
    return %c0_i32, %c0_i32_0 : i32, i32
  }
  func.func @transform_6(%arg0: i32) -> (i32, i32) {
    %c0_i32 = arith.constant 0 : i32
    %c0_i32_0 = arith.constant 0 : i32
    %c0_i32_1 = arith.constant 0 : i32
    return %c0_i32, %c0_i32_0 : i32, i32
  }
  func.func @transform_7(%arg0: i32) -> (i32, i32) {
    %c0_i32 = arith.constant 0 : i32
    %c0_i32_0 = arith.constant 0 : i32
    %c0_i32_1 = arith.constant 0 : i32
    return %c0_i32, %c0_i32_0 : i32, i32
  }
  func.func @transform_8(%arg0: i32) -> (i32, i32) {
    %c0_i32 = arith.constant 0 : i32
    %c0_i32_0 = arith.constant 0 : i32
    %c0_i32_1 = arith.constant 0 : i32
    return %c0_i32, %c0_i32_0 : i32, i32
  }
  func.func @transform_9(%arg0: i32) -> (i32, i32) {
    %c0_i32 = arith.constant 0 : i32
    %c0_i32_0 = arith.constant 0 : i32
    %c0_i32_1 = arith.constant 0 : i32
    return %c0_i32, %c0_i32_0 : i32, i32
  }
  func.func @transform_10(%arg0: i32) -> (i32, i32) {
    %c0_i32 = arith.constant 0 : i32
    %c0_i32_0 = arith.constant 0 : i32
    %c0_i32_1 = arith.constant 0 : i32
    return %c0_i32, %c0_i32_0 : i32, i32
  }
  func.func @transform_11(%arg0: i32) -> (i32, i32) {
    %c0_i32 = arith.constant 0 : i32
    %c0_i32_0 = arith.constant 0 : i32
    %c0_i32_1 = arith.constant 0 : i32
    return %c0_i32, %c0_i32_0 : i32, i32
  }
  func.func @transform_12(%arg0: i32) -> (i32, i32) {
    %c0_i32 = arith.constant 0 : i32
    %c0_i32_0 = arith.constant 0 : i32
    return %arg0, %c0_i32 : i32, i32
  }
}

</mosaic_0001>

<bundles_post_ra>
// kernel: tpu_custom_call.1
= control target key start
LH: loop header
LB: loop body
LE: loop exit
PB: predicated region body
PF: predicated region fallthrough
CT: control target
= control target key end

     0   :  { %17 = vsyncpa [#allocation3], 0  ;;  %s1149_s0 = inlined_call_operand.hbm [shape: f32[8,16], index: 0, kind: input, shape index: {}]   ;;  %s1150_s1 = inlined_call_operand.vmem [shape: f32[8,2], index: 1, kind: input, shape index: {}]   ;;  %s1151_s2 = inlined_call_operand.hbm [shape: f32[16,32], index: 2, kind: input, shape index: {}]   ;;  %s1152_s3 = inlined_call_operand.vmem [shape: f32[16,1], index: 3, kind: input, shape index: {}]   ;;  %s1153_s4 = inlined_call_operand.hbm [shape: f32[2,32], index: 4, kind: input, shape index: {}]   ;;  %s1154_s5 = inlined_call_operand.hbm [shape: f32[1,32], index: 5, kind: input, shape index: {}]   ;;  %s1155_s6 = inlined_call_operand.vmem [shape: f32[32,32], index: 6, kind: input, shape index: {}]   ;;  %s1156_s7 = inlined_call_operand.hbm [shape: f32[1,32], index: 7, kind: input, shape index: {}]   ;;  %s1157_s8 = inlined_call_operand.hbm [shape: f32[32,32], index: 8, kind: input, shape index: {}]   ;;  %s1158_s9 = inlined_call_operand.hbm [shape: f32[1,32], index: 9, kind: input, shape index: {}]   ;;  %s1159_s10 = inlined_call_operand.vmem [shape: f32[32,32], index: 10, kind: input, shape index: {}]   ;;  %s1160_s11 = inlined_call_operand.vmem [shape: f32[1,32], index: 11, kind: input, shape index: {}]   ;;  %s1161_s12 = inlined_call_operand.vmem [shape: f32[8,1], index: 12, kind: output, shape index: {}]  }
   0x1   :  { %18 = vsyncpa [#allocation5], 0 }
   0x2   :  { %19 = vsyncpa [#allocation8], 0 }
   0x3   :  { %20 = vsyncpa [#allocation11], 0  ;;  %s926_s21 = smov [#allocation4]   ;;  %s764_s25 = scalar_lea.hbm %s1151_s2, 256 }
   0x4   :  { %s38_s22 = sshll.u32 %s926_s21, 4  ;;  %p765_p0 = scmp.ne.s32.totalorder %s1151_s2, %s764_s25  ;;  %s39_s22 = int_to_ptr.vmem [resolvable:$true] %s38_s22 }
   0x5   :  { %p768_p1 = scmp.lt.u32.totalorder %s764_s25, %s1151_s2 }
   0x7   :  { %p770_p2 = pnand %p768_p1, %p765_p0 }
   0x9   :  { %773 = shalt.err (!%p770_p2)
}
   0xa   :  { %s774_s30 = scalar_lea.vmem %s39_s22, 256  ;;  %p779_p4 = scmp.lt.s32.totalorder %s39_s22, %s39_s22 }
   0xb   :  { %p775_p3 = scmp.ne.s32.totalorder %s39_s22, %s774_s30  ;;  %p780_p5 = scmp.lt.s32.totalorder %s774_s30, %s774_s30 }
   0xd   :  { %p781_p6 = por %p780_p5, %p779_p4 }
   0xf   :  { %p782_p7 = pnand %p781_p6, %p775_p3 }
  0x11   :  { %785 = shalt.err (!%p782_p7)
}
  0x12   :  { %s927_s13 = smov 128   ;;  %s928_s14 = smov 8  }
  0x13   :  { %44 = dma.hbm_to_vmem [thread:$0]  %s1151_s2, 256, %s39_s22, [#allocation5], %s927_s13, %s927_s13, %s928_s14  }
  0x14   :  { %s929_s17 = smov [#allocation7]   ;;  %s930_s19 = smov [#allocation10]  }
  0x15   :  { %s63_s18 = sshll.u32 %s929_s17, 4  ;;  %s84_s20 = sshll.u32 %s930_s19, 4  ;;  %s64_s18 = int_to_ptr.vmem [resolvable:$true] %s63_s18  ;;  %s85_s20 = int_to_ptr.vmem [resolvable:$true] %s84_s20 }
  0x16   :  { %s786_s24 = scalar_lea.hbm %s1154_s5, 16 }
  0x17   :  { %p787_p8 = scmp.ne.s32.totalorder %s1154_s5, %s786_s24  ;;  %p790_p9 = scmp.lt.u32.totalorder %s786_s24, %s1154_s5 }
  0x19   :  { %p792_p10 = pnand %p790_p9, %p787_p8 }
  0x1b   :  { %795 = shalt.err (!%p792_p10)
}
  0x1c   :  { %s796_s2 = scalar_lea.vmem %s64_s18, 16  ;;  %s800_s22 = scalar_lea.vmem %s64_s18, 32 }
  0x1d   :  { %p797_p11 = scmp.ne.s32.totalorder %s64_s18, %s796_s2  ;;  %p801_p12 = scmp.lt.s32.totalorder %s64_s18, %s64_s18 }
  0x1e   :  { %p802_p13 = scmp.lt.s32.totalorder %s800_s22, %s796_s2 }
  0x20   :  { %p803_p0 = por %p802_p13, %p801_p12 }
  0x22   :  { %p804_p1 = pnand %p803_p0, %p797_p11 }
  0x24   :  { %807 = shalt.err (!%p804_p1)
}
  0x25   :  { %66 = dma.hbm_to_vmem [thread:$0]  %s1154_s5, 16, %s64_s18, [#allocation8]  }
  0x26   :  { %s808_s17 = scalar_lea.hbm %s1157_s8, 512 }
  0x27   :  { %p809_p2 = scmp.ne.s32.totalorder %s1157_s8, %s808_s17  ;;  %p812_p3 = scmp.lt.u32.totalorder %s808_s17, %s1157_s8 }
  0x29   :  { %p814_p4 = pnand %p812_p3, %p809_p2 }
  0x2b   :  { %817 = shalt.err (!%p814_p4)
}
  0x2c   :  { %s818_s25 = scalar_lea.vmem %s85_s20, 512  ;;  %p823_p6 = scmp.lt.s32.totalorder %s85_s20, %s85_s20 }
  0x2d   :  { %p819_p5 = scmp.ne.s32.totalorder %s85_s20, %s818_s25  ;;  %p824_p7 = scmp.lt.s32.totalorder %s818_s25, %s818_s25 }
  0x2f   :  { %p825_p8 = por %p824_p7, %p823_p6 }
  0x31   :  { %p826_p9 = pnand %p825_p8, %p819_p5 }
  0x33   :  { %829 = shalt.err (!%p826_p9)
}
  0x34   :  { %90 = dma.hbm_to_vmem [thread:$0]  %s1157_s8, 512, %s85_s20, [#allocation11], %s927_s13, %s927_s13, %s928_s14  }
  0x35   :  { %s931_s26 = smov [#allocation2]   ;;  %s932_s28 = smov [#allocation6]  }
  0x36   :  { %s27_s27 = sshll.u32 %s931_s26, 4  ;;  %s53_s2 = sshll.u32 %s932_s28, 4  ;;  %s28_s27 = int_to_ptr.vmem [resolvable:$true] %s27_s27  ;;  %s54_s2 = int_to_ptr.vmem [resolvable:$true] %s53_s2 }
  0x37   :  { %s830_s30 = scalar_lea.hbm %s1149_s0, 128 }
  0x38   :  { %p831_p10 = scmp.ne.s32.totalorder %s1149_s0, %s830_s30  ;;  %p834_p11 = scmp.lt.u32.totalorder %s830_s30, %s1149_s0 }
  0x3a   :  { %p836_p12 = pnand %p834_p11, %p831_p10 }
  0x3c   :  { %839 = shalt.err (!%p836_p12)
}
  0x3d   :  { %s840_s8 = scalar_lea.vmem %s28_s27, 128  ;;  %p845_p0 = scmp.lt.s32.totalorder %s28_s27, %s28_s27 }
  0x3e   :  { %p841_p13 = scmp.ne.s32.totalorder %s28_s27, %s840_s8  ;;  %p846_p1 = scmp.lt.s32.totalorder %s840_s8, %s840_s8 }
  0x40   :  { %p847_p2 = por %p846_p1, %p845_p0 }
  0x42   :  { %p848_p3 = pnand %p847_p2, %p841_p13 }
  0x44   :  { %851 = shalt.err (!%p848_p3)
}
  0x45   :  { %30 = dma.hbm_to_vmem [thread:$0]  %s1149_s0, 128, %s28_s27, [#allocation3]  }
  0x46   :  { %s852_s23 = scalar_lea.hbm %s1153_s4, 32 }
  0x47   :  { %p853_p4 = scmp.ne.s32.totalorder %s1153_s4, %s852_s23  ;;  %p856_p5 = scmp.lt.u32.totalorder %s852_s23, %s1153_s4 }
  0x49   :  { %p858_p6 = pnand %p856_p5, %p853_p4 }
  0x4b   :  { %861 = shalt.err (!%p858_p6)
}
  0x4c   :  { %s862_s26 = scalar_lea.vmem %s54_s2, 32  ;;  %p867_p8 = scmp.lt.s32.totalorder %s54_s2, %s54_s2 }
  0x4d   :  { %p863_p7 = scmp.ne.s32.totalorder %s54_s2, %s862_s26  ;;  %p868_p9 = scmp.lt.s32.totalorder %s862_s26, %s862_s26 }
  0x4f   :  { %p869_p10 = por %p868_p9, %p867_p8 }
  0x51   :  { %p870_p11 = pnand %p869_p10, %p863_p7 }
  0x53   :  { %873 = shalt.err (!%p870_p11)
}
  0x54   :  { %56 = dma.hbm_to_vmem [thread:$0]  %s1153_s4, 32, %s54_s2, [#allocation5]  }
  0x55   :  { %s933_s28 = smov [#allocation9]   ;;  %s934_s29 = smov [#allocation12]  }
  0x56   :  { %s75_s22 = sshll.u32 %s933_s28, 4  ;;  %s97_s30 = sshll.u32 %s934_s29, 4  ;;  %s76_s22 = int_to_ptr.vmem [resolvable:$true] %s75_s22  ;;  %s98_s30 = int_to_ptr.vmem [resolvable:$true] %s97_s30 }
  0x57   :  { %s874_s17 = scalar_lea.hbm %s1156_s7, 16 }
  0x58   :  { %p875_p12 = scmp.ne.s32.totalorder %s1156_s7, %s874_s17  ;;  %p878_p13 = scmp.lt.u32.totalorder %s874_s17, %s1156_s7 }
  0x5a   :  { %p880_p0 = pnand %p878_p13, %p875_p12 }
  0x5c   :  { %883 = shalt.err (!%p880_p0)
}
  0x5d   :  { %s884_s4 = scalar_lea.vmem %s76_s22, 16  ;;  %s888_s2 = scalar_lea.vmem %s76_s22, 32 }
  0x5e   :  { %p885_p1 = scmp.ne.s32.totalorder %s76_s22, %s884_s4  ;;  %p889_p2 = scmp.lt.s32.totalorder %s76_s22, %s76_s22 }
  0x5f   :  { %p890_p3 = scmp.lt.s32.totalorder %s888_s2, %s884_s4 }
  0x61   :  { %p891_p4 = por %p890_p3, %p889_p2 }
  0x63   :  { %p892_p5 = pnand %p891_p4, %p885_p1 }
  0x65   :  { %895 = shalt.err (!%p892_p5)
}
  0x66   :  { %78 = dma.hbm_to_vmem [thread:$0]  %s1156_s7, 16, %s76_s22, [#allocation8]  }
  0x67   :  { %s896_s25 = scalar_lea.hbm %s1158_s9, 16 }
  0x68   :  { %p897_p6 = scmp.ne.s32.totalorder %s1158_s9, %s896_s25  ;;  %p900_p7 = scmp.lt.u32.totalorder %s896_s25, %s1158_s9 }
  0x6a   :  { %p902_p8 = pnand %p900_p7, %p897_p6 }
  0x6c   :  { %905 = shalt.err (!%p902_p8)
}
  0x6d   :  { %s906_s27 = scalar_lea.vmem %s98_s30, 16  ;;  %s910_s28 = scalar_lea.vmem %s98_s30, 32 }
  0x6e   :  { %p907_p9 = scmp.ne.s32.totalorder %s98_s30, %s906_s27  ;;  %p911_p10 = scmp.lt.s32.totalorder %s98_s30, %s98_s30 }
  0x6f   :  { %p912_p11 = scmp.lt.s32.totalorder %s910_s28, %s906_s27 }
  0x71   :  { %p913_p12 = por %p912_p11, %p911_p10 }
  0x73   :  { %p914_p13 = pnand %p913_p12, %p907_p9 }
  0x75   :  { %917 = shalt.err (!%p914_p13)
}
  0x76   :  { %100 = dma.hbm_to_vmem [thread:$0]  %s1158_s9, 16, %s98_s30, [#allocation11]  }
  0x77   :  { %918 = dma.done.wait [#allocation3], 128  }
  0x78   :  { %919 = vsyncadd [#allocation3], 4294967168 }
  0x79   :  { %920 = dma.done.wait [#allocation5], 288  }
  0x7a   :  { %921 = vsyncadd [#allocation5], 4294967008 }
  0x7b   :  { %922 = dma.done.wait [#allocation8], 32  }
  0x7c   :  { %923 = vsyncadd [#allocation8], 4294967264 }
  0x7d   :  { %924 = dma.done.wait [#allocation11], 528  }
  0x7e   :  { %925 = vsyncadd [#allocation11], 4294966768  ;;  %v935_v0 = vmov 0.0   ;;  %vm936_vm0 = vmmov 0   ;;  %vm139_vm1 = vcmask 1041408   ;;  %vm135_vm2 = vcmask 15360  }
  0x7f   :  { %668 = vmatprep.subr.mxu0 %v935_v0  ;;  %670 = vmatprep.mubr.msk.f32.mxu0 %vm936_vm0, %v935_v0  ;;  %v127_v1 = vld [vmem:[#allocation6] sm:$0x3]  ;;  %v126_v2 = vld [vmem:[%s1150_s1] sm:$0xff]  ;;  %v215_v4 = vld [vmem:[%s1155_s6 + $0x8] sm:$0xff]  ;;  %v937_v6 = vmov 0.0|0.0   ;;  %vm225_vm3 = vcmask 261120  }
  0x80   :  { %681 = vmatprep.mubr.msk.f32.mxu1 %vm936_vm0, %v935_v0  ;;  %669 = vmatpush3.msk.msra.mxu0 %vm139_vm1, %v127_v1  ;;  %v214_v3 = vld [vmem:[%s1155_s6] sm:$0xff]  ;;  %v216_v5 = vld [vmem:[%s1155_s6 + $0x10] sm:$0xff]  ;;  %v217_v8 = vld [vmem:[%s1155_s6 + $0x18] sm:$0xff]  ;;  %vm473_vm4 = vcmask 130048   ;;  %vm624_vm5 = vcmask 7168  }
  0x81   :  { %671 = vmatmul.mubr.msk.f32.vlgmr.msra.gmra.mrb[0].mxu0 %vm135_vm2, %v126_v2  ;;  %720 = vmatprep.subr.bf16.mxu1 %v937_v6  ;;  %v721_v7 = vpack.c.bf16 %v215_v4, %v214_v3  ;;  %v724_v9 = vpack.c.bf16 %v217_v8, %v216_v5  ;;  %v634_v10 = vld [vmem:[#allocation7] ss:$0 sm:$0xff]  ;;  %v300_v15 = vld [vmem:[#allocation10] sm:$0xff]  ;;  %v301_v16 = vld [vmem:[#allocation10 + $0x8] sm:$0xff] }
  0x82   :  { %692 = vmatprep.mubr.msk.f32.mxu0 %vm936_vm0, %v935_v0  ;;  %726 = vmatprep.subr.bf16.mxu0 %v937_v6  ;;  %v302_v17 = vld [vmem:[#allocation10 + $0x10] sm:$0xff]  ;;  %v727_v18 = vpack.c.bf16 %v301_v16, %v300_v15  ;;  %v303_v19 = vld [vmem:[#allocation10 + $0x18] sm:$0xff]  ;;  %v385_v26 = vld [vmem:[%s1159_s10] sm:$0xff] }
  0x83   :  { %722 = vmatpush3.bf16.msra.mxu1 %v721_v7  ;;  %v730_v20 = vpack.c.bf16 %v303_v19, %v302_v17  ;;  %v637_v21 = vld [vmem:[#allocation9] ss:$0 sm:$0xff]  ;;  %v386_v27 = vld [vmem:[%s1159_s10 + $0x8] sm:$0xff]  ;;  %v387_v28 = vld [vmem:[%s1159_s10 + $0x10] sm:$0xff] }
  0x84   :  { %723 = vmatprep.subr.bf16.mxu1 %v937_v6  ;;  %728 = vmatpush3.bf16.msra.mxu0 %v727_v18  ;;  %v733_v29 = vpack.c.bf16 %v386_v27, %v385_v26  ;;  %v388_v30 = vld [vmem:[%s1159_s10 + $0x18] sm:$0xff]  ;;  %v471_v32 = vld [vmem:[#allocation4] sm:$0xff]  ;;  %v472_v33 = vld [vmem:[#allocation4 + $0x8] sm:$0xff] }
  0x85   :  { %729 = vmatprep.subr.bf16.mxu0 %v937_v6  ;;  %v736_v31 = vpack.c.bf16 %v388_v30, %v387_v28  ;;  %v739_v34 = vpack.c.bf16 %v472_v33, %v471_v32  ;;  %v547_v35 = vld [vmem:[%s1152_s3] sm:$0xff]  ;;  %v548_v36 = vld [vmem:[%s1152_s3 + $0x8] sm:$0xff]  ;;  %v639_v39 = vld [vmem:[#allocation12] ss:$0 sm:$0xff] }
  0x86   :  { %v470_v37 = vld [vmem:[#allocation2] sm:$0xff]  ;;  %v742_v38 = vpack.c.bf16 %v548_v36, %v547_v35 }
  0x87   :  { %725 = vmatpush3.bf16.msra.mxu1 %v724_v9  ;;  %v641_v48 = vld [vmem:[%s1160_s11] ss:$0 sm:$0xff] }
  0x88   :  { %732 = vmatprep.subr.bf16.mxu1 %v937_v6  ;;  %731 = vmatpush3.bf16.msra.mxu0 %v730_v20 }
  0x89   :  { %738 = vmatprep.subr.bf16.mxu0 %v937_v6 }
 0x154   :  { %v209_v11 = vpop.f32.mrb[0].mxu0 }
 0x155   :  { %v210_v12 = vadd.f32 %v634_v10, %v209_v11  ;;  %v672_v13 = vpop.f32.mrb[1].mxu0 }
 0x157   :  { %756 = vtanh.f32 %v210_v12 }
 0x161   :  { %v757_v14 = vpop.eup %756 }
 0x162   :  { %682 = vmatmul.mubr.msk.f32.vlgmr.msra.gmra.mrb[0].mxu1 %vm225_vm3, %v757_v14 }
 0x163   :  { %703 = vmatprep.mubr.msk.f32.mxu1 %vm936_vm0, %v935_v0  ;;  %734 = vmatpush3.bf16.msra.mxu1 %v733_v29 }
 0x164   :  { %735 = vmatprep.subr.bf16.mxu1 %v937_v6 }
 0x167   :  { %737 = vmatpush3.bf16.msra.mxu1 %v736_v31 }
 0x235   :  { %v295_v22 = vpop.f32.mrb[0].mxu1 }
 0x236   :  { %v296_v23 = vadd.f32 %v637_v21, %v295_v22  ;;  %v683_v24 = vpop.f32.mrb[1].mxu1 }
 0x238   :  { %758 = vtanh.f32 %v296_v23 }
 0x242   :  { %v759_v25 = vpop.eup %758 }
 0x243   :  { %693 = vmatmul.mubr.msk.f32.vlgmr.msra.gmra.mrb[2].mxu0 %vm225_vm3, %v759_v25 }
 0x244   :  { %710 = vmatprep.mubr.msk.f32.mxu0 %vm936_vm0, %v935_v0  ;;  %740 = vmatpush3.bf16.msra.mxu0 %v739_v34 }
 0x245   :  { %741 = vmatprep.subr.bf16.mxu0 %v937_v6 }
 0x247   :  { %711 = vmatmul.mubr.msk.f32.vlgmr.msra.gmra.mrb[4].mxu0 %vm473_vm4, %v470_v37 }
 0x248   :  { %743 = vmatpush3.bf16.msra.mxu0 %v742_v38  ;;  %717 = vmatprep.mubr.msk.f32.mxu0 %vm936_vm0, %v935_v0 }
 0x24b   :  { %718 = vmatmul.mubr.msk.f32.vlgmr.msra.gmra.mrb[6].mxu0 %vm473_vm4, %v470_v37 }
 0x316   :  { %v380_v40 = vpop.f32.mrb[2].mxu0 }
 0x317   :  { %v381_v41 = vadd.f32 %v639_v39, %v380_v40  ;;  %v694_v42 = vpop.f32.mrb[3].mxu0 }
 0x319   :  { %760 = vtanh.f32 %v381_v41 }
 0x31a   :  { %v543_v44 = vpop.f32.mrb[4].mxu0 }
 0x31b   :  { %v712_v45 = vpop.f32.mrb[5].mxu0 }
 0x31e   :  { %v615_v46 = vpop.f32.mrb[6].mxu0 }
 0x31f   :  { %v719_v47 = vpop.f32.mrb[7].mxu0 }
 0x323   :  { %v761_v43 = vpop.eup %760 }
 0x324   :  { %704 = vmatmul.mubr.msk.f32.vlgmr.msra.gmra.mrb[2].mxu1 %vm225_vm3, %v761_v43 }
 0x3f7   :  { %v465_v49 = vpop.f32.mrb[2].mxu1 }
 0x3f8   :  { %v466_v50 = vadd.f32 %v641_v48, %v465_v49  ;;  %v705_v51 = vpop.f32.mrb[3].mxu1 }
 0x3fa   :  { %762 = vtanh.f32 %v466_v50 }
 0x404   :  { %v763_v52 = vpop.eup %762 }
 0x405   :  { %v619_v53 = vmul.f32 %v763_v52, %v543_v44 }
 0x407   :  { %v620_v54 = vsel %vm225_vm3, %v619_v53, 0.0 }
 0x408   :  { %621 = vadd.xlane.f32.xlu0 %v620_v54 }
 0x495   :  { %v622_v55 = vpop.xlane.xlu0 %621 }
 0x496   :  { %v623_v56 = vadd.f32 %v622_v55, %v615_v46 }
 0x498   :  { %625 = vst.msk [vmem:[%s1161_s12] sm:$0xff] %vm624_vm5, %v623_v56 }
 0x499   :  { %630 = vsyncpa [#allocation3], 1 }
 0x49a   :  { %631 = vsyncpa [#allocation5], 1 }
 0x49b   :  { %632 = vsyncpa [#allocation8], 1 }
 0x49c   :  { %633 = vsyncpa [#allocation11], 1 }

</bundles_post_ra>
